<compile_context>
chip_gen: v7x
topology: tpu7x:2x2x1
jax: 0.10.0
libtpu: 0.0.40
codegen_flags: <defaults>
</compile_context>

<pallas_src>
import jax
import jax.numpy as jnp
from jax.experimental import pallas as pl
from jax.experimental.pallas import tpu as pltpu


def _round_up(v, m):
    return ((v + m - 1) // m) * m


def _nk_plan(D, N, tn, tk):
    """Shared N/K tile + padding plan so pack_linear_params and linear_qa_head agree."""
    d_lane = _round_up(D, 128)
    tk = _round_up(max(128, min(tk, d_lane)), 128)
    n_lane = _round_up(N, 128)
    tn = _round_up(max(128, min(tn, n_lane)), 128)
    D_pad = _round_up(d_lane, tk)
    N_pad = _round_up(n_lane, tn)
    return tn, tk, D_pad, N_pad


def _vmem_capacity_bytes():
    try:
        cap = getattr(pltpu.get_tpu_info(), "vmem_capacity_bytes", None)
        if cap:
            return int(cap)
    except Exception:
        pass
    return 64 << 20  # conservative (v7x-sized) fallback


# ---------------------------------------------------------------------------
# Kernels
# ---------------------------------------------------------------------------
def _linear_kernel_acc(x_ref, w_ref, b_ref, o_ref, acc_ref):
    """x:(tm,tk) w:(tk,tn) b:(1,tn)f32 o:(tm,tn) acc:(tm,tn)f32 scratch."""
    k = pl.program_id(2)

    @pl.when(k == 0)
    def _():
        # Fold the bias into the accumulator init (epilogue becomes a pure cast).
        acc_ref[...] = jnp.broadcast_to(b_ref[...], acc_ref.shape)

    acc_ref[...] += jnp.dot(
        x_ref[...], w_ref[...], preferred_element_type=jnp.float32
    )

    @pl.when(k == pl.num_programs(2) - 1)
    def _():
        o_ref[...] = acc_ref[...].astype(o_ref.dtype)


def _linear_kernel_f32out(x_ref, w_ref, b_ref, o_ref):
    """f32 output: accumulate directly into the K-resident output block."""
    @pl.when(pl.program_id(2) == 0)
    def _():
        o_ref[...] = jnp.broadcast_to(b_ref[...], o_ref.shape)

    o_ref[...] += jnp.dot(
        x_ref[...], w_ref[...], preferred_element_type=jnp.float32
    )


# ---------------------------------------------------------------------------
# One-time parameter packing (do NOT call this per forward pass)
# ---------------------------------------------------------------------------
def pack_linear_params(weight, bias, *, tn=1024, tk=1024,
                       compute_dtype=jnp.bfloat16):
    """Pre-cast + pre-pad nn.Linear params once, outside the per-call path.

    weight: (N, D) PyTorch layout.  Returns:
      w_packed: (D_pad, N_pad) compute_dtype
      b_packed: (1, N_pad)     float32
    """
    N, D = weight.shape
    tn, tk, D_pad, N_pad = _nk_plan(D, N, tn, tk)
    w = weight.T.astype(compute_dtype)
    if (D_pad, N_pad) != (D, N):
        w = jnp.pad(w, ((0, D_pad - D), (0, N_pad - N)))
    b = bias.astype(jnp.float32).reshape(1, N)
    if N_pad != N:
        b = jnp.pad(b, ((0, 0), (0, N_pad - N)))
    return w, b


# ---------------------------------------------------------------------------
# Forward
# ---------------------------------------------------------------------------
def linear_qa_head(x, weight_t, bias, *, n_out=None, tm=512, tn=1024, tk=1024,
                   compute_dtype=jnp.bfloat16):
    """y = x @ weight_t + bias   (forward of LinearQAHead)

    x:        (..., D)
    weight_t: (D, N) raw weight (nn.Linear weight transposed), OR the already
              packed (D_pad, N_pad) array from pack_linear_params.
    bias:     (N,) raw bias, OR the packed (1, N_pad) f32 array.
    n_out:    logical number of logits; required when passing packed params
              whose padded width differs from the logical width.
    """
    *lead, D = x.shape
    if n_out is None:
        n_out = weight_t.shape[1]
    out_dtype = x.dtype

    M = 1
    for d in lead:
        M *= d

    bpe_c = jnp.dtype(compute_dtype).itemsize
    bpe_o = jnp.dtype(out_dtype).itemsize
    sub = 16 if bpe_c < 4 else 8  # sublane tile for the compute dtype

    # --- N / K tiles and padded extents (shared with pack_linear_params) ---
    tn, tk, D_pad, N_pad = _nk_plan(D, n_out, tn, tk)

    # --- M tile: capped, sublane-aligned ---
    tm = _round_up(max(sub, min(tm, _round_up(M, sub))), sub)
    # Megacore (v7x): when there is only one N tile, keep >= 2 M tiles so both
    # TensorCores get work; no-op on single-TC v5e/v6e and for tiny M.
    if N_pad // tn == 1 and M >= 2 * sub:
        half = _round_up(_round_up(M, sub) // 2, sub)
        tm = min(tm, max(sub, half))
    M_pad = _round_up(M, tm)

    # --- weights / bias: use pre-packed arrays as-is, pack inline otherwise ---
    if weight_t.shape == (D_pad, N_pad) and weight_t.dtype == jnp.dtype(compute_dtype):
        w2d = weight_t
    else:
        w2d = weight_t.astype(compute_dtype)
        if w2d.shape != (D_pad, N_pad):
            w2d = jnp.pad(w2d, ((0, D_pad - w2d.shape[0]), (0, N_pad - w2d.shape[1])))

    if bias.ndim == 2 and bias.shape == (1, N_pad) and bias.dtype == jnp.float32:
        b2d = bias
    else:
        b2d = bias.astype(jnp.float32).reshape(1, -1)
        if b2d.shape[1] != N_pad:
            b2d = jnp.pad(b2d, ((0, 0), (0, N_pad - b2d.shape[1])))

    # --- activations: cast/pad only when actually needed ---
    x2d = x.reshape(M, D)
    if x2d.dtype != jnp.dtype(compute_dtype):
        x2d = x2d.astype(compute_dtype)
    if M_pad != M or D_pad != D:
        x2d = jnp.pad(x2d, ((0, M_pad - M), (0, D_pad - D)))

    grid = (M_pad // tm, N_pad // tn, D_pad // tk)
    grid_m, grid_n, _ = grid

    f32_direct = jnp.dtype(out_dtype) == jnp.dtype(jnp.float32)
    if f32_direct:
        kernel = _linear_kernel_f32out
        scratch = []
        acc_bytes = 0
    else:
        kernel = _linear_kernel_acc
        scratch = [pltpu.VMEM((tm, tn), jnp.float32)]
        acc_bytes = tm * tn * 4

    # --- VMEM budget (tile_bytes already counts the 2x double buffering) ---
    tile_bytes = (
        2 * tm * tk * bpe_c      # x tile (double buffered)
        + 2 * tk * tn * bpe_c    # weight tile
        + 2 * 1 * tn * 4         # bias tile (f32)
        + 2 * tm * tn * bpe_o    # output tile
        + acc_bytes              # f32 accumulator scratch (if any)
    )
    budget_cap = min((_vmem_capacity_bytes() * 3) // 4, 100 << 20)
    vmem_limit = int(min(budget_cap, max(32 << 20, tile_bytes + (4 << 20))))

    # --- cost hint: actual streamed traffic (W re-read per M tile, x per N tile) ---
    cost = pl.CostEstimate(
        flops=2 * M_pad * D_pad * N_pad,
        transcendentals=0,
        bytes_accessed=(D_pad * N_pad * bpe_c) * grid_m
        + (M_pad * D_pad * bpe_c) * grid_n
        + M_pad * N_pad * bpe_o
        + N_pad * 4 * grid_m * grid_n,
    )

    out2d = pl.pallas_call(
        kernel,
        out_shape=jax.ShapeDtypeStruct((M_pad, N_pad), out_dtype),
        grid_spec=pltpu.PrefetchScalarGridSpec(
            num_scalar_prefetch=0,
            grid=grid,
            in_specs=[
                pl.BlockSpec((tm, tk), lambda i, j, k: (i, k)),   # x tile
                pl.BlockSpec((tk, tn), lambda i, j, k: (k, j)),   # weight tile
                pl.BlockSpec((1, tn), lambda i, j, k: (0, j)),    # bias tile
            ],
            out_specs=pl.BlockSpec((tm, tn), lambda i, j, k: (i, j)),
            scratch_shapes=scratch,
        ),
        compiler_params=pltpu.CompilerParams(
            dimension_semantics=("parallel", "parallel", "arbitrary"),
            vmem_limit_bytes=vmem_limit,
        ),
        cost_estimate=cost,
    )(x2d, w2d, b2d)

    if M_pad != M or N_pad != n_out:
        out2d = out2d[:M, :n_out]
    return out2d.reshape(*lead, n_out)


def init_linear_params(key, dim, output_logits, dtype=jnp.float32):
    # Deterministic init matching nn.Linear's uniform(-1/sqrt(dim), 1/sqrt(dim)).
    kw, kb = jax.random.split(key)
    bound = 1.0 / (dim ** 0.5)
    w = jax.random.uniform(kw, (output_logits, dim), dtype, -bound, bound)
    b = jax.random.uniform(kb, (output_logits,), dtype, -bound, bound)
    return w, b


if __name__ == "__main__":
    key = jax.random.PRNGKey(0)
    k_x, k_p = jax.random.split(key)

    batch, seq, dim, output_logits = 2, 8, 32, 16
    x = jax.random.normal(k_x, (batch, seq, dim), jnp.float32)

    w, b = init_linear_params(k_p, dim, output_logits)  # w: (N, D) like PyTorch

    # Path 1: pre-packed bf16 weights (one-time cast/pad), bf16 MXU, f32 accum.
    w_packed, b_packed = pack_linear_params(w, b)
    y = jax.block_until_ready(
        linear_qa_head(x, w_packed, b_packed, n_out=output_logits)
    )
    assert y.shape == (batch, seq, output_logits)
    y_ref_bf16 = (
        jnp.dot(x.astype(jnp.bfloat16).astype(jnp.float32),
                w.T.astype(jnp.bfloat16).astype(jnp.float32))
        + b.astype(jnp.float32)
    )
    assert jnp.allclose(y, y_ref_bf16, atol=2e-2, rtol=2e-2)

    # Path 2: raw weights, f32 compute: exact match to the nn.Linear reference
    # (f32 output accumulates directly into the output block, no scratch).
    y32 = jax.block_until_ready(
        linear_qa_head(x, w.T, b, compute_dtype=jnp.float32)
    )
    y_ref = x @ w.T + b
    assert jnp.allclose(y32, y_ref, atol=1e-5, rtol=1e-5)

    # TODO(synk): mask_scores / log_softmax / softmax / cross_entropy statics are
    # not part of the forward pass and are left to plain JAX.
    print("KERNEL_OK")
</pallas_src>

<mosaic_0001>
module attributes {stable_mosaic.version = 11 : i64} {
  func.func @_linear_kernel_f32out(%arg0: i32, %arg1: i32, %arg2: i32, %arg3: memref<16x128xbf16, #tpu.memory_space<vmem>>, %arg4: memref<128x128xbf16, #tpu.memory_space<vmem>>, %arg5: memref<1x128xf32, #tpu.memory_space<vmem>>, %arg6: memref<16x128xf32, #tpu.memory_space<vmem>>) attributes {dimension_semantics = [#tpu.dimension_semantics<parallel>, #tpu.dimension_semantics<parallel>, #tpu.dimension_semantics<arbitrary>], iteration_bounds = array<i64: 1, 1, 1>, scalar_prefetch = 0 : i64, scratch_operands = 0 : i64, tpu.core_type = #tpu.core_type<tc>, window_params = [{transform_indices = @transform_0, window_bounds = array<i64: 16, 128>}, {transform_indices = @transform_1, window_bounds = array<i64: 128, 128>}, {transform_indices = @transform_2, window_bounds = array<i64: 1, 128>}, {transform_indices = @transform_3, window_bounds = array<i64: 16, 128>}]} {
    %c0_i32 = arith.constant 0 : i32
    %0 = arith.cmpi eq, %arg2, %c0_i32 : i32
    %1 = arith.extui %0 : i1 to i32
    %c0_i32_0 = arith.constant 0 : i32
    %2 = arith.cmpi ne, %1, %c0_i32_0 : i32
    scf.if %2 {
      %c0_8 = arith.constant 0 : index
      %c0_9 = arith.constant 0 : index
      %9 = vector.load %arg5[%c0_8, %c0_9] : memref<1x128xf32, #tpu.memory_space<vmem>>, vector<1x128xf32>
      %10 = vector.shape_cast %9 : vector<1x128xf32> to vector<1x128xf32>
      %11 = vector.broadcast %10 : vector<1x128xf32> to vector<16x128xf32>
      %c0_10 = arith.constant 0 : index
      %c0_11 = arith.constant 0 : index
      %12 = vector.load %arg6[%c0_10, %c0_11] : memref<16x128xf32, #tpu.memory_space<vmem>>, vector<16x128xf32>
      tpu.vector_store %arg6[%c0_10, %c0_11], %11 {strides = array<i32>} : memref<16x128xf32, #tpu.memory_space<vmem>>, vector<16x128xf32>,
    } else {
    }
    %c0 = arith.constant 0 : index
    %c0_1 = arith.constant 0 : index
    %3 = vector.load %arg6[%c0, %c0_1] : memref<16x128xf32, #tpu.memory_space<vmem>>, vector<16x128xf32>
    %c0_2 = arith.constant 0 : index
    %c0_3 = arith.constant 0 : index
    %4 = vector.load %arg3[%c0_2, %c0_3] : memref<16x128xbf16, #tpu.memory_space<vmem>>, vector<16x128xbf16>
    %c0_4 = arith.constant 0 : index
    %c0_5 = arith.constant 0 : index
    %5 = vector.load %arg4[%c0_4, %c0_5] : memref<128x128xbf16, #tpu.memory_space<vmem>>, vector<128x128xbf16>
    %cst = arith.constant dense<0.000000e+00> : vector<16x128xf32>
    %6 = tpu.matmul %4, %5, %cst {dimension_numbers = #tpu.dot_dimension_numbers<[1], [0], [0], [1], [0, 0, 1, 1], [], []>} : vector<16x128xbf16>, vector<128x128xbf16>, vector<16x128xf32> -> vector<16x128xf32>
    %7 = arith.addf %3, %6 : vector<16x128xf32>
    %c0_6 = arith.constant 0 : index
    %c0_7 = arith.constant 0 : index
    %8 = vector.load %arg6[%c0_6, %c0_7] : memref<16x128xf32, #tpu.memory_space<vmem>>, vector<16x128xf32>
    tpu.vector_store %arg6[%c0_6, %c0_7], %7 {strides = array<i32>} : memref<16x128xf32, #tpu.memory_space<vmem>>, vector<16x128xf32>,
    return
  }
  func.func @transform_0(%arg0: i32, %arg1: i32, %arg2: i32) -> (i32, i32) {
    %c0_i32 = arith.constant 0 : i32
    return %arg0, %arg2 : i32, i32
  }
  func.func @transform_1(%arg0: i32, %arg1: i32, %arg2: i32) -> (i32, i32) {
    %c0_i32 = arith.constant 0 : i32
    return %arg2, %arg1 : i32, i32
  }
  func.func @transform_2(%arg0: i32, %arg1: i32, %arg2: i32) -> (i32, i32) {
    %c0_i32 = arith.constant 0 : i32
    %c0_i32_0 = arith.constant 0 : i32
    return %c0_i32, %arg1 : i32, i32
  }
  func.func @transform_3(%arg0: i32, %arg1: i32, %arg2: i32) -> (i32, i32) {
    %c0_i32 = arith.constant 0 : i32
    return %arg0, %arg1 : i32, i32
  }
}

</mosaic_0001>

<bundles_post_ra>
// kernel: tpu_custom_call.1
= control target key start
LH: loop header
LB: loop body
LE: loop exit
PB: predicated region body
PF: predicated region fallthrough
CT: control target
= control target key end

     0   :  { %8 = vsyncpa [#allocation3], 0  ;;  %s391_s0 = inlined_call_operand.hbm [shape: bf16[16,128], index: 0, kind: input, shape index: {}]   ;;  %s392_s1 = inlined_call_operand.hbm [shape: bf16[128,128], index: 1, kind: input, shape index: {}]   ;;  %s393_s2 = inlined_call_operand.vmem [shape: f32[1,128], index: 2, kind: input, shape index: {}]   ;;  %s394_s3 = inlined_call_operand.hbm [shape: f32[16,128], index: 3, kind: output, shape index: {}]  }
   0x1   :  { %9 = vsyncpa [#allocation6], 0 }
   0x2   :  { %10 = vsyncpa [#allocation4], 0  ;;  %s323_s12 = smov [#allocation2]   ;;  %s251_s16 = scalar_lea.hbm %s391_s0, 128 }
   0x3   :  { %s16_s13 = sshll.u32 %s323_s12, 4  ;;  %p252_p0 = scmp.ne.s32.totalorder %s391_s0, %s251_s16  ;;  %s17_s13 = int_to_ptr.vmem [resolvable:$true] %s16_s13 }
   0x4   :  { %p255_p1 = scmp.lt.u32.totalorder %s251_s16, %s391_s0 }
   0x6   :  { %p257_p2 = pnand %p255_p1, %p252_p0 }
   0x8   :  { %260 = shalt.err (!%p257_p2)
}
   0x9   :  { %s261_s21 = scalar_lea.vmem %s17_s13, 128  ;;  %p266_p4 = scmp.lt.s32.totalorder %s17_s13, %s17_s13 }
   0xa   :  { %p262_p3 = scmp.ne.s32.totalorder %s17_s13, %s261_s21  ;;  %p267_p5 = scmp.lt.s32.totalorder %s261_s21, %s261_s21 }
   0xc   :  { %p268_p6 = por %p267_p5, %p266_p4 }
   0xe   :  { %p269_p7 = pnand %p268_p6, %p262_p3 }
  0x10   :  { %272 = shalt.err (!%p269_p7)
}
  0x11   :  { %s324_s22 = smov 64   ;;  %s325_s23 = smov 4  }
  0x12   :  { %22 = dma.hbm_to_vmem [thread:$0]  %s391_s0, 128, %s17_s13, [#allocation3], %s324_s22, %s324_s22, %s325_s23  }
  0x13   :  { %s326_s26 = smov [#allocation5]   ;;  %s273_s30 = scalar_lea.hbm %s392_s1, 1024 }
  0x14   :  { %s28_s27 = sshll.u32 %s326_s26, 4  ;;  %p274_p8 = scmp.ne.s32.totalorder %s392_s1, %s273_s30  ;;  %s29_s27 = int_to_ptr.vmem [resolvable:$true] %s28_s27 }
  0x15   :  { %p277_p9 = scmp.lt.u32.totalorder %s273_s30, %s392_s1 }
  0x17   :  { %p279_p10 = pnand %p277_p9, %p274_p8 }
  0x19   :  { %282 = shalt.err (!%p279_p10)
}
  0x1a   :  { %s283_s8 = scalar_lea.vmem %s29_s27, 1024  ;;  %p288_p12 = scmp.lt.s32.totalorder %s29_s27, %s29_s27 }
  0x1b   :  { %p284_p11 = scmp.ne.s32.totalorder %s29_s27, %s283_s8  ;;  %p289_p13 = scmp.lt.s32.totalorder %s283_s8, %s283_s8 }
  0x1d   :  { %p290_p0 = por %p289_p13, %p288_p12 }
  0x1f   :  { %p291_p1 = pnand %p290_p0, %p284_p11 }
  0x21   :  { %294 = shalt.err (!%p291_p1)
}
  0x22   :  { %34 = dma.hbm_to_vmem [thread:$0]  %s392_s1, 1024, %s29_s27, [#allocation6], %s324_s22, %s324_s22, %s325_s23  }
  0x23   :  { %317 = dma.done.wait [#allocation3], 128  }
  0x24   :  { %318 = vsyncadd [#allocation3], 4294967168 }
  0x25   :  { %319 = dma.done.wait [#allocation6], 1024  }
  0x26   :  { %320 = vsyncadd [#allocation6], 4294966272  ;;  %v327_v0 = vmov 0.0   ;;  %vm328_vm0 = vmmov 0   ;;  %v242_v1 = vld [vmem:[#allocation5] sm:$0xff]   ;;  %v243_v2 = vld [vmem:[#allocation5 + $0x8] sm:$0xff]  }
  0x27   :  { %213 = vmatprep.subr.bf16.mxu0 %v327_v0  ;;  %229 = vmatprep.mubr.msk.bf16.mxu0 %vm328_vm0, %v327_v0  ;;  %v244_v3 = vld [vmem:[#allocation5 + $0x10] sm:$0xff]   ;;  %v245_v4 = vld [vmem:[#allocation5 + $0x18] sm:$0xff]   ;;  %v246_v5 = vld [vmem:[#allocation5 + $0x20] sm:$0xff]   ;;  %s329_s11 = smov [#allocation7]  }
  0x28   :  { %214 = vmatpush3.bf16.msra.mxu0 %v242_v1  ;;  %v247_v6 = vld [vmem:[#allocation5 + $0x28] sm:$0xff]   ;;  %v248_v7 = vld [vmem:[#allocation5 + $0x30] sm:$0xff]   ;;  %v249_v8 = vld [vmem:[#allocation5 + $0x38] sm:$0xff]   ;;  %s181_s12 = sshll.u32 %s329_s11, 4  ;;  %s182_s12 = int_to_ptr.vmem [resolvable:$true] %s181_s12 }
  0x29   :  { %215 = vmatprep.subr.bf16.mxu0 %v327_v0  ;;  %v250_v9 = vld [vmem:[#allocation2] sm:$0xff]   ;;  %s295_s13 = scalar_lea.vmem %s182_s12, 256  ;;  %p300_p3 = scmp.lt.s32.totalorder %s182_s12, %s182_s12 }
  0x2a   :  { %v194_v10 = vld [vmem:[%s393_s2] ss:$0 sm:$0xff]  ;;  %p296_p2 = scmp.ne.s32.totalorder %s182_s12, %s295_s13  ;;  %p301_p4 = scmp.lt.s32.totalorder %s295_s13, %s295_s13 }
  0x2c   :  { %216 = vmatpush3.bf16.msra.mxu0 %v243_v2  ;;  %p302_p5 = por %p301_p4, %p300_p3 }
  0x2d   :  { %217 = vmatprep.subr.bf16.mxu0 %v327_v0 }
  0x2e   :  { %p303_p6 = pnand %p302_p5, %p296_p2 }
  0x30   :  { %218 = vmatpush3.bf16.msra.mxu0 %v244_v3 }
  0x31   :  { %219 = vmatprep.subr.bf16.mxu0 %v327_v0 }
  0x34   :  { %220 = vmatpush3.bf16.msra.mxu0 %v245_v4 }
  0x35   :  { %221 = vmatprep.subr.bf16.mxu0 %v327_v0 }
  0x38   :  { %222 = vmatpush3.bf16.msra.mxu0 %v246_v5 }
  0x39   :  { %223 = vmatprep.subr.bf16.mxu0 %v327_v0 }
  0x3c   :  { %224 = vmatpush3.bf16.msra.mxu0 %v247_v6 }
  0x3d   :  { %225 = vmatprep.subr.bf16.mxu0 %v327_v0 }
  0x40   :  { %226 = vmatpush3.bf16.msra.mxu0 %v248_v7 }
  0x41   :  { %227 = vmatprep.subr.bf16.mxu0 %v327_v0 }
  0x44   :  { %228 = vmatpush3.bf16.msra.mxu0 %v249_v8 }
  0x47   :  { %230 = vmatmul.mubr.bf16.vlgmr.msra.gmra.mrb[0].mxu0 %v250_v9 }
 0x11a   :  { %v165_v11 = vpop.f32.mrb[0].mxu0 }
 0x11b   :  { %v172_v12 = vadd.f32 %v194_v10, %v165_v11  ;;  %v231_v13 = vpop.f32.mrb[1].mxu0 }
 0x11c   :  { %v168_v14 = vpop.f32.mrb[2].mxu0 }
 0x11d   :  { %174 = vst [vmem:[#allocation7] sm:$0xff] %v172_v12  ;;  %v173_v15 = vadd.f32 %v194_v10, %v168_v14  ;;  %v232_v16 = vpop.f32.mrb[3].mxu0 }
 0x11f   :  { %175 = vst [vmem:[#allocation7 + $0x8] sm:$0xff] %v173_v15 }
 0x120   :  { %306 = shalt.err (!%p303_p6)
}
 0x121   :  { %s307_s15 = scalar_lea.hbm %s394_s3, 256 }
 0x122   :  { %p308_p7 = scmp.ne.s32.totalorder %s394_s3, %s307_s15  ;;  %p311_p8 = scmp.lt.u32.totalorder %s307_s15, %s394_s3 }
 0x124   :  { %p313_p9 = pnand %p311_p8, %p308_p7 }
 0x126   :  { %316 = shalt.err (!%p313_p9)
}
 0x127   :  { %s330_s20 = smov 128   ;;  %s331_s21 = smov 8  }
 0x128   :  { %187 = dma.vmem_to_hbm [thread:$0]  %s182_s12, 256, %s394_s3, [#allocation4], %s330_s20, %s330_s20, %s331_s21  }
 0x129   :  { %321 = dma.done.wait [#allocation4], 256  }
 0x12a   :  { %322 = vsyncadd [#allocation4], 4294967040 }
 0x12b   :  { %191 = vsyncpa [#allocation3], 1 }
 0x12c   :  { %192 = vsyncpa [#allocation6], 1 }
 0x12d   :  { %193 = vsyncpa [#allocation4], 1 }

</bundles_post_ra>
